<compile_context>
chip_gen: v5e
topology: v5e:2x2
jax: 0.10.0
libtpu: 0.0.40
codegen_flags: <defaults>
</compile_context>

<pallas_src>
import jax
import jax.numpy as jnp
from jax.experimental import pallas as pl
from jax.experimental.pallas import tpu as pltpu

BN_EPS = 1e-5


def unit_kernel(patches_ref, w_ref, gb_ref, out_ref):
    """Fused conv-as-one-matmul + BatchNorm2d (batch stats) + ReLU.

    patches_ref: (K, M)     im2col patches, rows ordered (kh, kw, cin),
                            M = N*H*W on the lane axis (multiple of 128)
    w_ref      : (Cout, K)  conv weight, columns ordered (kh, kw, cin)
    gb_ref     : (Cout, 2)  column 0 = BN gamma, column 1 = BN beta
    out_ref    : (Cout, M)  lane-dense output
    """
    m = patches_ref.shape[1]

    # ---- convolution: a single MXU matmul, K=100-deep contraction ----
    # Conv bias is omitted: a per-channel bias is exactly cancelled by the
    # BN batch-mean subtraction below, so it has no effect on the output.
    acc = jnp.dot(w_ref[...], patches_ref[...],
                  preferred_element_type=jnp.float32)        # (Cout, M) f32

    # ---- BatchNorm2d (training mode), one-pass biased batch stats ----
    s = jnp.sum(acc, axis=1, keepdims=True)                   # (Cout, 1)
    ss = jnp.sum(acc * acc, axis=1, keepdims=True)            # (Cout, 1)
    inv_m = 1.0 / m
    mean = s * inv_m
    var = jnp.maximum(ss * inv_m - mean * mean, 0.0)           # clamp >= 0
    gamma = gb_ref[:, 0:1]                                     # (Cout, 1)
    beta = gb_ref[:, 1:2]                                      # (Cout, 1)
    scale = jax.lax.rsqrt(var + BN_EPS) * gamma                # (Cout, 1)
    shift = beta - mean * scale                                # (Cout, 1)

    # ---- normalize (1 mul + 1 add) + ReLU, lane-dense store ----
    out_ref[...] = jnp.maximum(acc * scale + shift, 0.0)       # (Cout, M)


def unit_forward(x_nchw, w_oihw, bias, gamma, beta):
    """x_nchw: (N, Cin, H, W) f32. Returns (N, Cout, H, W) f32."""
    del bias  # cancelled exactly by BN batch-mean subtraction (see kernel)
    N, Cin, H, W = x_nchw.shape
    Cout, _, KH, KW = w_oihw.shape
    P = KH // 2
    M = N * H * W
    K = KH * KW * Cin

    # ---- glue (stays in XLA): channels-major pad + im2col as (K, M) ----
    x_cf = jnp.transpose(x_nchw.astype(jnp.float32), (1, 0, 2, 3))  # (Cin,N,H,W)
    x_pad = jnp.pad(x_cf, ((0, 0), (0, 0), (P, P), (P, P)))
    taps = [x_pad[:, :, kh:kh + H, kw:kw + W].reshape(Cin, M)
            for kh in range(KH) for kw in range(KW)]
    patches_t = jnp.concatenate(taps, axis=0)                   # (K, M)

    # (Cout, Cin, KH, KW) -> (Cout, KH, KW, Cin) -> (Cout, K), cols (kh,kw,cin)
    w_t = jnp.transpose(w_oihw.astype(jnp.float32), (0, 2, 3, 1)).reshape(Cout, K)

    # gamma/beta merged into one operand: (Cout, 2)
    gb = jnp.stack([gamma.astype(jnp.float32), beta.astype(jnp.float32)], axis=1)

    out2d = pl.pallas_call(
        unit_kernel,
        out_shape=jax.ShapeDtypeStruct((Cout, M), jnp.float32),
        # Gridless: all operands are single VMEM-resident blocks (tiny shapes).
        in_specs=[pl.BlockSpec(memory_space=pltpu.MemorySpace.VMEM)] * 3,
        out_specs=pl.BlockSpec(memory_space=pltpu.MemorySpace.VMEM),
    )(patches_t, w_t, gb)

    # (Cout, M) -> (N, Cout, H, W): one tiny transpose.
    return jnp.transpose(out2d.reshape(Cout, N, H, W), (1, 0, 2, 3))


def unit_reference(x_nchw, w_oihw, bias, gamma, beta):
    """Pure-JAX reference (lax conv + batch-stat BN + relu) for validation."""
    conv = jax.lax.conv_general_dilated(
        x_nchw.astype(jnp.float32), w_oihw.astype(jnp.float32),
        window_strides=(1, 1), padding=((2, 2), (2, 2)),
        dimension_numbers=("NCHW", "OIHW", "NCHW"))
    conv = conv + bias[None, :, None, None]
    mean = jnp.mean(conv, axis=(0, 2, 3), keepdims=True)
    var = jnp.mean((conv - mean) ** 2, axis=(0, 2, 3), keepdims=True)
    y = (conv - mean) * jax.lax.rsqrt(var + BN_EPS)
    y = y * gamma[None, :, None, None] + beta[None, :, None, None]
    return jnp.maximum(y, 0.0)


if __name__ == "__main__":
    N, Cin, H, W = 2, 4, 16, 16
    Cout, Ksz = 8, 5

    key = jax.random.PRNGKey(0)
    kx, kw, kb = jax.random.split(key, 3)

    x = jax.random.normal(kx, (N, Cin, H, W), jnp.float32)
    # Deterministic parameter init (synthetic; shapes match nn.Conv2d/BatchNorm2d).
    fan_in = Cin * Ksz * Ksz
    w = jax.random.normal(kw, (Cout, Cin, Ksz, Ksz), jnp.float32) / jnp.sqrt(fan_in)
    b = jax.random.normal(kb, (Cout,), jnp.float32) * 0.1
    gamma = jnp.ones((Cout,), jnp.float32)   # PyTorch BatchNorm2d default weight
    beta = jnp.zeros((Cout,), jnp.float32)   # PyTorch BatchNorm2d default bias

    out = jax.block_until_ready(unit_forward(x, w, b, gamma, beta))
    ref = jax.block_until_ready(unit_reference(x, w, b, gamma, beta))

    assert out.shape == (N, Cout, H, W)
    assert jnp.max(jnp.abs(out - ref)) < 1e-4, "mismatch vs reference"

    print("KERNEL_OK")
</pallas_src>

<mosaic_0001>
module attributes {stable_mosaic.version = 11 : i64} {
  func.func @unit_kernel(%arg0: memref<100x512xf32, #tpu.memory_space<vmem>>, %arg1: memref<8x100xf32, #tpu.memory_space<vmem>>, %arg2: memref<8x2xf32, #tpu.memory_space<vmem>>, %arg3: memref<8x512xf32, #tpu.memory_space<vmem>>) attributes {dimension_semantics = [], scalar_prefetch = 0 : i64, scratch_operands = 0 : i64, tpu.core_type = #tpu.core_type<tc>} {
    %c0 = arith.constant 0 : index
    %c0_0 = arith.constant 0 : index
    %0 = vector.load %arg1[%c0, %c0_0] : memref<8x100xf32, #tpu.memory_space<vmem>>, vector<8x100xf32>
    %c0_1 = arith.constant 0 : index
    %c0_2 = arith.constant 0 : index
    %1 = vector.load %arg0[%c0_1, %c0_2] : memref<100x512xf32, #tpu.memory_space<vmem>>, vector<100x512xf32>
    %cst = arith.constant dense<0.000000e+00> : vector<8x512xf32>
    %2 = tpu.matmul %0, %1, %cst {dimension_numbers = #tpu.dot_dimension_numbers<[1], [0], [0], [1], [0, 0, 1, 1], [], []>} : vector<8x100xf32>, vector<100x512xf32>, vector<8x512xf32> -> vector<8x512xf32>
    %cst_3 = arith.constant dense<0.000000e+00> : vector<8xf32>
    %3 = vector.multi_reduction <add>, %2, %cst_3 [1] : vector<8x512xf32> to vector<8xf32>
    %4 = vector.shape_cast %3 : vector<8xf32> to vector<8x1xf32>
    %5 = arith.mulf %2, %2 : vector<8x512xf32>
    %cst_4 = arith.constant dense<0.000000e+00> : vector<8xf32>
    %6 = vector.multi_reduction <add>, %5, %cst_4 [1] : vector<8x512xf32> to vector<8xf32>
    %7 = vector.shape_cast %6 : vector<8xf32> to vector<8x1xf32>
    %cst_5 = arith.constant 0.001953125 : f32
    %8 = vector.broadcast %cst_5 : f32 to vector<8x1xf32>
    %9 = arith.mulf %4, %8 : vector<8x1xf32>
    %cst_6 = arith.constant 0.001953125 : f32
    %10 = vector.broadcast %cst_6 : f32 to vector<8x1xf32>
    %11 = arith.mulf %7, %10 : vector<8x1xf32>
    %12 = arith.mulf %9, %9 : vector<8x1xf32>
    %13 = arith.subf %11, %12 : vector<8x1xf32>
    %cst_7 = arith.constant 0.000000e+00 : f32
    %14 = vector.broadcast %cst_7 : f32 to vector<8x1xf32>
    %15 = arith.maximumf %13, %14 : vector<8x1xf32>
    %c0_8 = arith.constant 0 : index
    %c0_9 = arith.constant 0 : index
    %16 = vector.load %arg2[%c0_8, %c0_9] : memref<8x2xf32, #tpu.memory_space<vmem>>, vector<8x1xf32>
    %c0_10 = arith.constant 0 : index
    %c1 = arith.constant 1 : index
    %17 = vector.load %arg2[%c0_10, %c1] : memref<8x2xf32, #tpu.memory_space<vmem>>, vector<8x1xf32>
    %cst_11 = arith.constant 9.99999974E-6 : f32
    %18 = vector.broadcast %cst_11 : f32 to vector<8x1xf32>
    %19 = arith.addf %15, %18 : vector<8x1xf32>
    %20 = math.rsqrt %19 : vector<8x1xf32>
    %21 = arith.mulf %20, %16 : vector<8x1xf32>
    %22 = arith.mulf %9, %21 : vector<8x1xf32>
    %23 = arith.subf %17, %22 : vector<8x1xf32>
    %24 = vector.broadcast %21 : vector<8x1xf32> to vector<8x512xf32>
    %25 = arith.mulf %2, %24 : vector<8x512xf32>
    %26 = vector.broadcast %23 : vector<8x1xf32> to vector<8x512xf32>
    %27 = arith.addf %25, %26 : vector<8x512xf32>
    %cst_12 = arith.constant 0.000000e+00 : f32
    %28 = vector.broadcast %cst_12 : f32 to vector<8x512xf32>
    %29 = arith.maximumf %27, %28 : vector<8x512xf32>
    %c0_13 = arith.constant 0 : index
    %c0_14 = arith.constant 0 : index
    %30 = vector.load %arg3[%c0_13, %c0_14] : memref<8x512xf32, #tpu.memory_space<vmem>>, vector<8x512xf32>
    tpu.vector_store %arg3[%c0_13, %c0_14], %29 {strides = array<i32>} : memref<8x512xf32, #tpu.memory_space<vmem>>, vector<8x512xf32>,
    return
  }
}

</mosaic_0001>

<bundles_post_ra>
// kernel: tpu_custom_call.1
= control target key start
LH: loop header
LB: loop body
LE: loop exit
PB: predicated region body
PF: predicated region fallthrough
CT: control target
= control target key end

     0   :  { %8 = vsyncpa [#allocation3], 0  ;;  %s373_s0 = inlined_call_operand.hbm [shape: f32[100,512], index: 0, kind: input, shape index: {}]   ;;  %s374_s1 = inlined_call_operand.vmem [shape: f32[8,100], index: 1, kind: input, shape index: {}]   ;;  %s375_s2 = inlined_call_operand.vmem [shape: f32[8,2], index: 2, kind: input, shape index: {}]   ;;  %s376_s3 = inlined_call_operand.hbm [shape: f32[8,512], index: 3, kind: output, shape index: {}]  }
   0x1   :  { %9 = vsyncpa [#allocation4], 0  ;;  %s14_s14 = sshll.u32 %s373_s0, 4  ;;  %s334_s15 = smov [#allocation2]   ;;  %s15_s14 = int_to_ptr.hbm [resolvable:$true] %s14_s14 }
   0x2   :  { %s16_s16 = sshll.u32 %s334_s15, 4  ;;  %s335_s17 = smov 512   ;;  %s17_s16 = int_to_ptr.vmem [resolvable:$true] %s16_s16 }
   0x3   :  { %s336_s18 = smov 32  }
   0x4   :  { %22 = dma.hbm_to_vmem [thread:$0]  %s15_s14, 6656, %s17_s16, [#allocation3], %s335_s17, %s335_s17, %s336_s18  }
   0x5   :  { %330 = dma.done.wait [#allocation3], 6656  }
   0x6   :  { %331 = vsyncadd [#allocation3], 4294960640  ;;  %vm88_vm0 = vcmask 1043456   ;;  %v82_v0 = vld [vmem:[#allocation2 + $0x190] sm:$0xf]  ;;  %v79_v6 = vld [vmem:[#allocation2 + $0x178] sm:$0xff] }
   0x7   :  { %v78_v1 = vld [vmem:[#allocation2 + $0x170] sm:$0xff]  ;;  %v83_v2 = vld [vmem:[#allocation2 + $0x198] sm:$0xf]  ;;  %266 = vmatpush.msk.msra.mxu2 %vm88_vm0, %v82_v0  ;;  %v80_v3 = vld [vmem:[#allocation2 + $0x180] sm:$0xf]  ;;  %vm84_vm1 = vcmask 818176  }
   0x8   :  { %268 = vmatpush.msk.msra.mxu3 %vm88_vm0, %v83_v2  ;;  %v81_v4 = vld [vmem:[#allocation2 + $0x188] sm:$0xf]  ;;  %v74_v5 = vld [vmem:[#allocation2 + $0x150] sm:$0xff]  ;;  %262 = vmatpush.msk.msra.mxu0 %vm88_vm0, %v80_v3  ;;  %v76_v7 = vld [vmem:[#allocation2 + $0x160] sm:$0xff]  ;;  %s338_s21 = smov 1   ;;  %s252_s25 = sshll.u32 %s376_s3, 4  ;;  %s253_s25 = int_to_ptr.hbm [resolvable:$true] %s252_s25 }
   0x9   :  { %264 = vmatpush.msk.msra.mxu1 %vm88_vm0, %v81_v4  ;;  %v77_v8 = vld [vmem:[#allocation2 + $0x168] sm:$0xff]  ;;  %145 = vmatpush.msra.mxu2 %v78_v1  ;;  %v75_v9 = vld [vmem:[#allocation2 + $0x158] sm:$0xff]  ;;  %v72_v10 = vld [vmem:[#allocation2 + $0x140] sm:$0xff] }
   0xa   :  { %165 = vmatpush.msra.mxu3 %v79_v6  ;;  %105 = vmatpush.msra.mxu0 %v76_v7  ;;  %v70_v11 = vld [vmem:[#allocation2 + $0x130] sm:$0xff]  ;;  %v73_v12 = vld [vmem:[#allocation2 + $0x148] sm:$0xff]  ;;  %v71_v13 = vld [vmem:[#allocation2 + $0x138] sm:$0xff]  ;;  %v337_v6 = vmov 0  }
   0xb   :  { %125 = vmatpush.msra.mxu1 %v77_v8  ;;  %146 = vmatpush.msra.mxu2 %v74_v5  ;;  %v68_v14 = vld [vmem:[#allocation2 + $0x120] sm:$0xff]  ;;  %v69_v15 = vld [vmem:[#allocation2 + $0x128] sm:$0xff]  ;;  %v66_v16 = vld [vmem:[#allocation2 + $0x110] sm:$0xff] }
   0xc   :  { %166 = vmatpush.msra.mxu3 %v75_v9  ;;  %106 = vmatpush.msra.mxu0 %v72_v10  ;;  %v67_v17 = vld [vmem:[#allocation2 + $0x118] sm:$0xff]  ;;  %v64_v18 = vld [vmem:[#allocation2 + $0x100] sm:$0xff]  ;;  %v65_v19 = vld [vmem:[#allocation2 + $0x108] sm:$0xff] }
   0xd   :  { %126 = vmatpush.msra.mxu1 %v73_v12  ;;  %147 = vmatpush.msra.mxu2 %v70_v11  ;;  %v62_v20 = vld [vmem:[#allocation2 + $0xf0] sm:$0xff]  ;;  %v63_v21 = vld [vmem:[#allocation2 + $0xf8] sm:$0xff]  ;;  %v60_v22 = vld [vmem:[#allocation2 + $0xe0] sm:$0xff] }
   0xe   :  { %167 = vmatpush.msra.mxu3 %v71_v13  ;;  %107 = vmatpush.msra.mxu0 %v68_v14  ;;  %v61_v23 = vld [vmem:[#allocation2 + $0xe8] sm:$0xff]  ;;  %v58_v24 = vld [vmem:[#allocation2 + $0xd0] sm:$0xff]  ;;  %v59_v25 = vld [vmem:[#allocation2 + $0xd8] sm:$0xff] }
   0xf   :  { %127 = vmatpush.msra.mxu1 %v69_v15  ;;  %148 = vmatpush.msra.mxu2 %v66_v16  ;;  %v56_v26 = vld [vmem:[#allocation2 + $0xc0] sm:$0xff]  ;;  %v57_v27 = vld [vmem:[#allocation2 + $0xc8] sm:$0xff]  ;;  %v54_v28 = vld [vmem:[#allocation2 + $0xb0] sm:$0xff] }
  0x10   :  { %168 = vmatpush.msra.mxu3 %v67_v17  ;;  %108 = vmatpush.msra.mxu0 %v64_v18  ;;  %v55_v29 = vld [vmem:[#allocation2 + $0xb8] sm:$0xff]  ;;  %v52_v30 = vld [vmem:[#allocation2 + $0xa0] sm:$0xff]  ;;  %v53_v31 = vld [vmem:[#allocation2 + $0xa8] sm:$0xff] }
  0x11   :  { %128 = vmatpush.msra.mxu1 %v65_v19  ;;  %149 = vmatpush.msra.mxu2 %v62_v20  ;;  %v50_v32 = vld [vmem:[#allocation2 + $0x90] sm:$0xff]  ;;  %v51_v33 = vld [vmem:[#allocation2 + $0x98] sm:$0xff]  ;;  %v48_v34 = vld [vmem:[#allocation2 + $0x80] sm:$0xff] }
  0x12   :  { %169 = vmatpush.msra.mxu3 %v63_v21  ;;  %109 = vmatpush.msra.mxu0 %v60_v22  ;;  %v49_v35 = vld [vmem:[#allocation2 + $0x88] sm:$0xff]  ;;  %v46_v36 = vld [vmem:[#allocation2 + $0x70] sm:$0xff]  ;;  %v47_v37 = vld [vmem:[#allocation2 + $0x78] sm:$0xff]  ;;  %v339_v22 = vmov 1  }
  0x13   :  { %129 = vmatpush.msra.mxu1 %v61_v23  ;;  %150 = vmatpush.msra.mxu2 %v58_v24  ;;  %v44_v38 = vld [vmem:[#allocation2 + $0x60] sm:$0xff]  ;;  %v45_v39 = vld [vmem:[#allocation2 + $0x68] sm:$0xff]  ;;  %v42_v40 = vld [vmem:[#allocation2 + $0x50] sm:$0xff] }
  0x14   :  { %170 = vmatpush.msra.mxu3 %v59_v25  ;;  %110 = vmatpush.msra.mxu0 %v56_v26  ;;  %v43_v41 = vld [vmem:[#allocation2 + $0x58] sm:$0xff]  ;;  %v40_v42 = vld [vmem:[#allocation2 + $0x40] sm:$0xff]  ;;  %v41_v43 = vld [vmem:[#allocation2 + $0x48] sm:$0xff] }
  0x15   :  { %130 = vmatpush.msra.mxu1 %v57_v27  ;;  %151 = vmatpush.msra.mxu2 %v54_v28  ;;  %v38_v44 = vld [vmem:[#allocation2 + $0x30] sm:$0xff]  ;;  %v39_v45 = vld [vmem:[#allocation2 + $0x38] sm:$0xff]  ;;  %v36_v46 = vld [vmem:[#allocation2 + $0x20] sm:$0xff] }
  0x16   :  { %171 = vmatpush.msra.mxu3 %v55_v29  ;;  %111 = vmatpush.msra.mxu0 %v52_v30  ;;  %v37_v47 = vld [vmem:[#allocation2 + $0x28] sm:$0xff]  ;;  %v34_v48 = vld [vmem:[#allocation2 + $0x10] sm:$0xff]  ;;  %v35_v49 = vld [vmem:[#allocation2 + $0x18] sm:$0xff] }
  0x17   :  { %131 = vmatpush.msra.mxu1 %v53_v31  ;;  %152 = vmatpush.msra.mxu2 %v50_v32  ;;  %v31_v50 = vld [vmem:[%s374_s1] sm:$0xff]  ;;  %v33_v52 = vld [vmem:[#allocation2 + $0x8] sm:$0xff] }
  0x18   :  { %172 = vmatpush.msra.mxu3 %v51_v33  ;;  %112 = vmatpush.msra.mxu0 %v48_v34  ;;  %v32_v51 = vld [vmem:[#allocation2] sm:$0xff] }
  0x19   :  { %132 = vmatpush.msra.mxu1 %v49_v35  ;;  %153 = vmatpush.msra.mxu2 %v46_v36  ;;  %v200_v17 = vld [vmem:[%s375_s2] sm:$0xff]  ;;  %s340_s2 = smov [#allocation5]  }
  0x1a   :  { %173 = vmatpush.msra.mxu3 %v47_v37  ;;  %113 = vmatpush.msra.mxu0 %v44_v38  ;;  %s250_s22 = sshll.u32 %s340_s2, 4  ;;  %s251_s22 = int_to_ptr.vmem [resolvable:$true] %s250_s22 }
  0x1b   :  { %133 = vmatpush.msra.mxu1 %v45_v39  ;;  %154 = vmatpush.msra.mxu2 %v42_v40 }
  0x1c   :  { %174 = vmatpush.msra.mxu3 %v43_v41  ;;  %114 = vmatpush.msra.mxu0 %v40_v42 }
  0x1d   :  { %134 = vmatpush.msra.mxu1 %v41_v43  ;;  %155 = vmatpush.msra.mxu2 %v38_v44 }
  0x1e   :  { %175 = vmatpush.msra.mxu3 %v39_v45  ;;  %115 = vmatpush.msra.mxu0 %v36_v46 }
  0x1f   :  { %135 = vmatpush.msra.mxu1 %v37_v47  ;;  %156 = vmatpush.msra.mxu2 %v34_v48 }
  0x20   :  { %176 = vmatpush.msra.mxu3 %v35_v49  ;;  %267 = vmatmul.msk.f32.vlgmr.msra.gmra.mxu2 %vm84_vm1, %v31_v50 }
  0x21   :  { %269 = vmatmul.msk.f32.vlgmr.msra.gmra.mxu3 %vm84_vm1, %v31_v50  ;;  %116 = vmatpush.msra.mxu0 %v32_v51 }
  0x22   :  { %136 = vmatpush.msra.mxu1 %v33_v52  ;;  %263 = vmatmul.msk.f32.vlgmr.msra.gmra.mxu0 %vm84_vm1, %v31_v50 }
  0x23   :  { %265 = vmatmul.msk.f32.vlgmr.msra.gmra.mxu1 %vm84_vm1, %v31_v50  ;;  %277 = vset.pattern.permute.xlu1 %v337_v6 }
  0x24   :  { %278 = vset.pattern.permute.xlu2 %v339_v22  ;;  %279 = vset.pattern.permute.xlu0 %v339_v22 }
  0x9f   :  { %v118_v53 = vpop.f32.mrf.mxu0 }
  0xa0   :  { %v138_v54 = vpop.f32.mrf.mxu1  ;;  %v186_v56 = vmul.f32 %v118_v53, %v118_v53 }
  0xa1   :  { %v181_v55 = vadd.f32 %v138_v54, %v118_v53  ;;  %v187_v57 = vmul.f32 %v138_v54, %v138_v54 }
  0xa3   :  { %v158_v58 = vpop.f32.mrf.mxu2  ;;  %v190_v61 = vadd.f32 %v187_v57, %v186_v56 }
  0xa4   :  { %v178_v59 = vpop.f32.mrf.mxu3  ;;  %v182_v60 = vadd.f32 %v181_v55, %v158_v58  ;;  %v188_v62 = vmul.f32 %v158_v58, %v158_v58 }
  0xa5   :  { %v189_v0 = vmul.f32 %v178_v59, %v178_v59 }
  0xa6   :  { %v183_v63 = vadd.f32 %v182_v60, %v178_v59  ;;  %v191_v1 = vadd.f32 %v190_v61, %v188_v62 }
  0xa8   :  { %184 = vadd.xlane.f32.xlu0 %v183_v63  ;;  %v192_v2 = vadd.f32 %v191_v1, %v189_v0 }
  0xb0   :  { %193 = vadd.xlane.f32.xlu0 %v192_v2 }
 0x11b   :  { %v185_v3 = vpop.xlane.xlu0 %184 }
 0x11c   :  { %v195_v4 = vmul.f32 0.001953125, %v185_v3 }
 0x11e   :  { %v197_v7 = vmul.f32 %v195_v4, %v195_v4 }
 0x123   :  { %v194_v5 = vpop.xlane.xlu0 %193 }
 0x124   :  { %v196_v8 = vmul.f32 0.001953125, %v194_v5 }
 0x126   :  { %v198_v9 = vsub.f32 %v196_v8, %v197_v7 }
 0x128   :  { %v199_v10 = vmax.f32 %v198_v9, 0.0 }
 0x12a   :  { %v201_v11 = vadd.f32 1e-05, %v199_v10 }
 0x12c   :  { %280 = vrsqrt.f32 %v201_v11  ;;  %vm208_vm3 = vweird.f32 %v201_v11 }
 0x132   :  { %v281_v12 = vpop.eup %280 }
 0x133   :  { %v203_v13 = vmul.f32 %v281_v12, %v201_v11  ;;  %vm209_vm2 = vweird.f32 %v281_v12 }
 0x134   :  { %vm210_vm4 = vmor %vm208_vm3, %vm209_vm2 }
 0x135   :  { %v204_v14 = vmul.f32 %v281_v12, %v203_v13 }
 0x137   :  { %v205_v15 = vmul.f32 0.5, %v204_v14 }
 0x139   :  { %v206_v16 = vsub.f32 1.5, %v205_v15 }
 0x13b   :  { %v207_v18 = vmul.f32 %v281_v12, %v206_v16 }
 0x13d   :  { %v211_v19 = vsel %vm210_vm4, %v281_v12, %v207_v18 }
 0x13e   :  { %v212_v20 = vmul.f32 %v211_v19, %v200_v17 }
 0x140   :  { %v213_v21 = vmul.f32 %v212_v20, %v195_v4 }
 0x142   :  { %215 = vrot.lane.b32.xlu1 %v213_v21, %s338_s21 }
 0x14a   :  { %221 = vperm.xlu1 %277, %v212_v20  }
 0x1b4   :  { %v216_v23 = vpop.permute.xlu1 %215 }
 0x1b5   :  { %v218_v24 = vsub.f32 %v200_v17, %v216_v23 }
 0x1b7   :  { %230 = vperm.xlu2 %278, %v218_v24  }
 0x1bc   :  { %v222_v25 = vpop.permute.xlu1 %221 }
 0x1bd   :  { %v224_v26 = vmul.f32 %v222_v25, %v118_v53  ;;  %v225_v27 = vmul.f32 %v222_v25, %v138_v54  ;;  %v226_v28 = vmul.f32 %v222_v25, %v158_v58  ;;  %v227_v29 = vmul.f32 %v222_v25, %v178_v59 }
 0x211   :  { %v231_v30 = vpop.permute.xlu2 %230 }
 0x212   :  { %v233_v31 = vadd.f32 %v231_v30, %v224_v26  ;;  %v234_v32 = vadd.f32 %v231_v30, %v225_v27  ;;  %v235_v33 = vadd.f32 %v231_v30, %v226_v28  ;;  %v236_v34 = vadd.f32 %v231_v30, %v227_v29 }
 0x214   :  { %v237_v35 = vmax.f32 %v233_v31, 0.0  ;;  %v238_v36 = vmax.f32 %v234_v32, 0.0  ;;  %v239_v37 = vmax.f32 %v235_v33, 0.0  ;;  %v240_v38 = vmax.f32 %v236_v34, 0.0 }
 0x216   :  { %241 = vst [vmem:[#allocation5] sm:$0xff] %v237_v35 }
 0x217   :  { %242 = vst [vmem:[#allocation5 + $0x8] sm:$0xff] %v238_v36 }
 0x218   :  { %243 = vst [vmem:[#allocation5 + $0x10] sm:$0xff] %v239_v37 }
 0x219   :  { %244 = vst [vmem:[#allocation5 + $0x18] sm:$0xff] %v240_v38 }
 0x21a   :  { %255 = dma.vmem_to_hbm [thread:$0]  %s251_s22, 512, %s253_s25, [#allocation4]  }
 0x21b   :  { %332 = dma.done.wait [#allocation4], 512  }
 0x21c   :  { %333 = vsyncadd [#allocation4], 4294966784 }
 0x21d   :  { %260 = vsyncpa [#allocation3], 1 }
 0x21e   :  { %261 = vsyncpa [#allocation4], 1 }

</bundles_post_ra>
